<compile_context>
chip_gen: v7x
topology: tpu7x:2x2x1
jax: 0.10.0
libtpu: 0.0.40
codegen_flags: <defaults>
</compile_context>

<pallas_src>
import functools
import math

import jax
import jax.numpy as jnp
from jax import lax
from jax.experimental import pallas as pl
from jax.experimental.pallas import tpu as pltpu


# ---------------------------------------------------------------------------
# Elementwise helpers
# ---------------------------------------------------------------------------
def _hswish(y):
    # Hardswish: x * relu6(x + 3) / 6  (exactly nn.Hardswish)
    return y * jnp.clip(y + 3.0, 0.0, 6.0) * (1.0 / 6.0)


# ---------------------------------------------------------------------------
# Fused 1x1-conv (+ folded BN, + optional hswish, + optional residual) kernel
# ---------------------------------------------------------------------------
def _matmul_kernel(x_ref, w_ref, s_ref, b_ref, o_ref, *, act):
    y = jnp.dot(x_ref[...], w_ref[...], preferred_element_type=jnp.float32)
    y = y * s_ref[...] + b_ref[...]
    if act:
        y = _hswish(y)
    o_ref[...] = y.astype(o_ref.dtype)


def _matmul_res_kernel(x_ref, w_ref, s_ref, b_ref, r_ref, o_ref, *, act):
    y = jnp.dot(x_ref[...], w_ref[...], preferred_element_type=jnp.float32)
    y = y * s_ref[...] + b_ref[...]
    if act:
        y = _hswish(y)
    o_ref[...] = (y + r_ref[...]).astype(o_ref.dtype)


def _pick_bm(M):
    # Largest row-block (multiple of 8, <= 512) that divides M and gives >= 2 grid
    # steps when possible (keeps both v7x TensorCores busy, no HBM padding passes).
    for c in (512, 256, 128, 64, 32, 16, 8):
        if c < M and M % c == 0:
            return c
    return M


def matmul_scale_bias_act(x, w, scale, bias, act, residual=None):
    """y = (optional hswish)((x @ w) * scale + bias) [+ residual]."""
    M, K = x.shape
    N = w.shape[1]
    bm = _pick_bm(M)
    s2, b2 = scale.reshape(1, N), bias.reshape(1, N)
    in_specs = [
        pl.BlockSpec((bm, K), lambda i: (i, 0)),
        pl.BlockSpec((K, N), lambda i: (0, 0)),
        pl.BlockSpec((1, N), lambda i: (0, 0)),
        pl.BlockSpec((1, N), lambda i: (0, 0)),
    ]
    args = [x, w, s2, b2]
    if residual is None:
        kern = functools.partial(_matmul_kernel, act=act)
    else:
        kern = functools.partial(_matmul_res_kernel, act=act)
        in_specs.append(pl.BlockSpec((bm, N), lambda i: (i, 0)))
        args.append(residual)
    return pl.pallas_call(
        kern,
        out_shape=jax.ShapeDtypeStruct((M, N), jnp.float32),
        grid=(M // bm,),
        in_specs=in_specs,
        out_specs=pl.BlockSpec((bm, N), lambda i: (i, 0)),
        compiler_params=pltpu.CompilerParams(dimension_semantics=("parallel",)),
    )(*args)


def apply_conv1x1(x, p, residual=None):
    B, H, W, C = x.shape
    N = p["w"].shape[1]
    r = residual.reshape(B * H * W, N) if residual is not None else None
    y = matmul_scale_bias_act(x.reshape(B * H * W, C), p["w"], p["s"], p["b"],
                              p["act"], r)
    return y.reshape(B, H, W, N)


# ---------------------------------------------------------------------------
# Fused depthwise(ks) + BN + act  ->  pointwise 1x1 + BN + act  [-> +residual]
# (used for the stem DSConv residual blocks and for LiteMLA's dw5x5+grouped-1x1)
# ---------------------------------------------------------------------------
def _dw_pw_kernel(xp_ref, wd_ref, sd_ref, bd_ref, wp_ref, sp_ref, bp_ref, o_ref,
                  *, ks, H, W, act_dw, act_pw, residual):
    pd = ks // 2
    xp = xp_ref[0]                    # (H+2p, W+2p, C) zero-padded input
    wd = wd_ref[...]                  # (ks, ks, C)
    C = xp.shape[-1]
    acc = jnp.zeros((H, W, C), jnp.float32)
    # hoist the width shift out of the double loop: ks shifts instead of ks*ks
    for dwi in range(ks):
        xw = xp[:, dwi:dwi + W, :]
        for dhi in range(ks):
            acc = acc + xw[dhi:dhi + H] * wd[dhi, dwi][None, None, :]
    acc = acc * sd_ref[0][None, None, :] + bd_ref[0][None, None, :]
    if act_dw:
        acc = _hswish(acc)
    y = jnp.dot(acc.reshape(H * W, C), wp_ref[...],
                preferred_element_type=jnp.float32)
    y = y * sp_ref[...] + bp_ref[...]
    if act_pw:
        y = _hswish(y)
    if residual:
        y = y + xp[pd:pd + H, pd:pd + W, :].reshape(H * W, -1)
    o_ref[0] = y.reshape(H, W, -1).astype(o_ref.dtype)


def apply_fused_dw_pw(x, dw_p, pw_p, ks, residual):
    B, H, W, C = x.shape
    Cout = pw_p["w"].shape[1]
    pad = ks // 2
    Hp, Wp = H + 2 * pad, W + 2 * pad
    xp = jnp.pad(x, ((0, 0), (pad, pad), (pad, pad), (0, 0)))
    kern = functools.partial(_dw_pw_kernel, ks=ks, H=H, W=W,
                             act_dw=dw_p["act"], act_pw=pw_p["act"],
                             residual=residual)
    return pl.pallas_call(
        kern,
        out_shape=jax.ShapeDtypeStruct((B, H, W, Cout), jnp.float32),
        grid=(B,),
        in_specs=[
            pl.BlockSpec((1, Hp, Wp, C), lambda b: (b, 0, 0, 0)),
            pl.BlockSpec((ks, ks, C), lambda b: (0, 0, 0)),
            pl.BlockSpec((1, C), lambda b: (0, 0)),
            pl.BlockSpec((1, C), lambda b: (0, 0)),
            pl.BlockSpec((C, Cout), lambda b: (0, 0)),
            pl.BlockSpec((1, Cout), lambda b: (0, 0)),
            pl.BlockSpec((1, Cout), lambda b: (0, 0)),
        ],
        out_specs=pl.BlockSpec((1, H, W, Cout), lambda b: (b, 0, 0, 0)),
        compiler_params=pltpu.CompilerParams(dimension_semantics=("parallel",)),
    )(xp, dw_p["w"], dw_p["s"].reshape(1, C), dw_p["b"].reshape(1, C),
      pw_p["w"], pw_p["s"].reshape(1, Cout), pw_p["b"].reshape(1, Cout))


# ---------------------------------------------------------------------------
# Fused MBConv: 1x1 expand + hswish -> dw3x3 + hswish -> 1x1 project [-> +res]
# The expanded "mid" tensor is kept on-chip; it never round-trips through HBM.
# ---------------------------------------------------------------------------
def _mbconv_s1_kernel(xp_ref, m_ref, w1_ref, s1_ref, b1_ref,
                      wd_ref, sd_ref, bd_ref, w2_ref, s2_ref, b2_ref, o_ref,
                      *, H, W, residual):
    Hp, Wp = H + 2, W + 2
    Cmid = w1_ref.shape[-1]
    xp = xp_ref[0]                                           # (Hp, Wp, Cin) padded
    Cin = xp.shape[-1]
    # 1x1 expand + folded BN + hswish (computed on the padded grid, halo ring is
    # then masked to zero so the depthwise conv sees true zero padding of "mid").
    mid = jnp.dot(xp.reshape(Hp * Wp, Cin), w1_ref[...],
                  preferred_element_type=jnp.float32)
    mid = _hswish(mid * s1_ref[...] + b1_ref[...])
    mid = mid.reshape(Hp, Wp, Cmid) * m_ref[...]
    # depthwise 3x3 + folded BN + hswish (width shift hoisted out of the loop)
    wd = wd_ref[...]
    acc = jnp.zeros((H, W, Cmid), jnp.float32)
    for dwi in range(3):
        xw = mid[:, dwi:dwi + W, :]
        for dhi in range(3):
            acc = acc + xw[dhi:dhi + H] * wd[dhi, dwi][None, None, :]
    acc = _hswish(acc * sd_ref[0][None, None, :] + bd_ref[0][None, None, :])
    # 1x1 project + folded BN (+ residual)
    y = jnp.dot(acc.reshape(H * W, Cmid), w2_ref[...],
                preferred_element_type=jnp.float32)
    y = y * s2_ref[...] + b2_ref[...]
    if residual:
        y = y + xp[1:1 + H, 1:1 + W, :].reshape(H * W, -1)
    o_ref[0] = y.reshape(H, W, -1).astype(o_ref.dtype)


def _mbconv_s2_kernel(xq_ref, m_ref, w1_ref, s1_ref, b1_ref,
                      wd_ref, sd_ref, bd_ref, w2_ref, s2_ref, b2_ref, o_ref,
                      *, Ho, Wo):
    # Stride-2 MBConv computed directly at the output resolution:
    # xq holds the 4 (row,col)-parity planes of the zero-padded input, so every
    # 3x3 tap of the stride-2 depthwise is a unit-stride slice of one plane.
    Hq, Wq = Ho + 1, Wo + 1
    Cmid = w1_ref.shape[-1]
    xq = xq_ref[0]                                           # (4, Hq, Wq, Cin)
    Cin = xq.shape[-1]
    mid = jnp.dot(xq.reshape(4 * Hq * Wq, Cin), w1_ref[...],
                  preferred_element_type=jnp.float32)
    mid = _hswish(mid * s1_ref[...] + b1_ref[...])
    mid = mid.reshape(4, Hq, Wq, Cmid) * m_ref[...]          # zero the halo samples
    wd = wd_ref[...]
    acc = jnp.zeros((Ho, Wo, Cmid), jnp.float32)
    for dhi in range(3):
        for dwi in range(3):
            plane = (dhi % 2) * 2 + (dwi % 2)
            tap = mid[plane, dhi // 2:dhi // 2 + Ho, dwi // 2:dwi // 2 + Wo, :]
            acc = acc + tap * wd[dhi, dwi][None, None, :]
    acc = _hswish(acc * sd_ref[0][None, None, :] + bd_ref[0][None, None, :])
    y = jnp.dot(acc.reshape(Ho * Wo, Cmid), w2_ref[...],
                preferred_element_type=jnp.float32)
    y = y * s2_ref[...] + b2_ref[...]
    o_ref[0] = y.reshape(Ho, Wo, -1).astype(o_ref.dtype)


def _ring_mask(H, W):
    m = jnp.zeros((H + 2, W + 2), jnp.float32).at[1:H + 1, 1:W + 1].set(1.0)
    return m[..., None]                                       # (H+2, W+2, 1)


def _parity_planes(x):
    # (B, H, W, C) -> (B, 4, H/2+1, W/2+1, C): parity planes of the zero-padded x.
    xp = jnp.pad(x, ((0, 0), (1, 1), (1, 1), (0, 0)))
    planes = [xp[:, r::2, c::2, :] for r in (0, 1) for c in (0, 1)]
    return jnp.stack(planes, axis=1)


def _parity_masks(Ho, Wo):
    # 1.0 where the parity-plane sample comes from the real image, 0.0 on the halo.
    Hq, Wq = Ho + 1, Wo + 1
    row = jnp.arange(Hq)
    col = jnp.arange(Wq)
    masks = []
    for r in (0, 1):
        rbad = (row == 0) if r == 0 else (row == Hq - 1)
        for c in (0, 1):
            cbad = (col == 0) if c == 0 else (col == Wq - 1)
            bad = jnp.logical_or(rbad[:, None], cbad[None, :])
            masks.append(jnp.where(bad, 0.0, 1.0))
    return jnp.stack(masks, 0)[..., None].astype(jnp.float32)  # (4, Hq, Wq, 1)


def apply_fused_mbconv(x, p, stride, residual):
    B, H, W, Cin = x.shape
    inv, dep, pnt = p["inverted"], p["depth"], p["point"]
    Cmid = inv["w"].shape[1]
    Cout = pnt["w"].shape[1]
    w_args = (inv["w"], inv["s"].reshape(1, Cmid), inv["b"].reshape(1, Cmid),
              dep["w"], dep["s"].reshape(1, Cmid), dep["b"].reshape(1, Cmid),
              pnt["w"], pnt["s"].reshape(1, Cout), pnt["b"].reshape(1, Cout))
    w_specs = [
        pl.BlockSpec((Cin, Cmid), lambda b: (0, 0)),
        pl.BlockSpec((1, Cmid), lambda b: (0, 0)),
        pl.BlockSpec((1, Cmid), lambda b: (0, 0)),
        pl.BlockSpec((3, 3, Cmid), lambda b: (0, 0, 0)),
        pl.BlockSpec((1, Cmid), lambda b: (0, 0)),
        pl.BlockSpec((1, Cmid), lambda b: (0, 0)),
        pl.BlockSpec((Cmid, Cout), lambda b: (0, 0)),
        pl.BlockSpec((1, Cout), lambda b: (0, 0)),
        pl.BlockSpec((1, Cout), lambda b: (0, 0)),
    ]
    if stride == 1:
        Hp, Wp = H + 2, W + 2
        xin = jnp.pad(x, ((0, 0), (1, 1), (1, 1), (0, 0)))
        mask = _ring_mask(H, W)
        kern = functools.partial(_mbconv_s1_kernel, H=H, W=W, residual=residual)
        data_specs = [pl.BlockSpec((1, Hp, Wp, Cin), lambda b: (b, 0, 0, 0)),
                      pl.BlockSpec((Hp, Wp, 1), lambda b: (0, 0, 0))]
        Hoo, Woo = H, W
    else:
        Ho, Wo = H // 2, W // 2
        Hq, Wq = Ho + 1, Wo + 1
        xin = _parity_planes(x)
        mask = _parity_masks(Ho, Wo)
        kern = functools.partial(_mbconv_s2_kernel, Ho=Ho, Wo=Wo)
        data_specs = [pl.BlockSpec((1, 4, Hq, Wq, Cin), lambda b: (b, 0, 0, 0, 0)),
                      pl.BlockSpec((4, Hq, Wq, 1), lambda b: (0, 0, 0, 0))]
        Hoo, Woo = Ho, Wo
    return pl.pallas_call(
        kern,
        out_shape=jax.ShapeDtypeStruct((B, Hoo, Woo, Cout), jnp.float32),
        grid=(B,),
        in_specs=data_specs + w_specs,
        out_specs=pl.BlockSpec((1, Hoo, Woo, Cout), lambda b: (b, 0, 0, 0)),
        compiler_params=pltpu.CompilerParams(dimension_semantics=("parallel",)),
    )(xin, mask, *w_args)


# ---------------------------------------------------------------------------
# LiteMLA relu-linear attention: all heads of a batch in one grid step.
# ---------------------------------------------------------------------------
def _litemla_kernel(qkv_ref, agg_ref, o_ref, *, heads, d, eps):
    outs = []
    for src_ref in (qkv_ref, agg_ref):          # group order matches torch.cat
        src = src_ref[0]                        # (L, 3*heads*d)
        L = src.shape[0]
        ones = jnp.ones((L, 1), jnp.float32)
        for h in range(heads):
            base = 3 * d * h
            q = jnp.maximum(src[:, base:base + d], 0.0)          # ReLU kernel fn
            k = jnp.maximum(src[:, base + d:base + 2 * d], 0.0)
            v = src[:, base + 2 * d:base + 3 * d]
            v1 = jnp.concatenate([v, ones], axis=1)               # fold denominator
            kv = lax.dot_general(k, v1, (((0,), (0,)), ((), ())),
                                 preferred_element_type=jnp.float32)  # (d, d+1)
            o = jnp.dot(q, kv, preferred_element_type=jnp.float32)    # (L, d+1)
            outs.append(o[:, :d] / (o[:, d:d + 1] + eps))
    # single lane-dense store of all heads
    o_ref[0] = jnp.concatenate(outs, axis=1).astype(o_ref.dtype)


def litemla_attention(qkv_f, agg_f, heads, d, eps=1e-15):
    B, L, T3 = qkv_f.shape
    Nout = 2 * heads * d
    return pl.pallas_call(
        functools.partial(_litemla_kernel, heads=heads, d=d, eps=eps),
        out_shape=jax.ShapeDtypeStruct((B, L, Nout), jnp.float32),
        grid=(B,),
        in_specs=[pl.BlockSpec((1, L, T3), lambda b: (b, 0, 0)),
                  pl.BlockSpec((1, L, T3), lambda b: (b, 0, 0))],
        out_specs=pl.BlockSpec((1, L, Nout), lambda b: (b, 0, 0)),
        compiler_params=pltpu.CompilerParams(dimension_semantics=("parallel",)),
    )(qkv_f, agg_f)


def apply_litemla(x, p, dim):
    B, H, W, C = x.shape
    qkv = apply_conv1x1(x, p["qkv"])                               # (B,H,W,3T)
    agg = apply_fused_dw_pw(qkv, p["agg_dw"], p["agg_pw"], ks=5, residual=False)
    T3 = qkv.shape[-1]
    heads = T3 // (3 * dim)
    L = H * W
    att = litemla_attention(qkv.reshape(B, L, T3), agg.reshape(B, L, T3),
                            heads, dim)                            # (B, L, 2T)
    att = att.reshape(B, H, W, 2 * heads * dim)
    return apply_conv1x1(att, p["proj"], residual=x)               # proj + residual


# ---------------------------------------------------------------------------
# Stem 3x3 stride-2 dense conv via im2col (only 3 input channels -> 27-wide K).
# ---------------------------------------------------------------------------
def apply_stem_conv(x, p):
    B, H, W, C = x.shape
    xp = jnp.pad(x, ((0, 0), (1, 1), (1, 1), (0, 0)))
    Ho, Wo = H // 2, W // 2
    cols = [xp[:, dh:dh + 2 * Ho:2, dw:dw + 2 * Wo:2, :]
            for dh in range(3) for dw in range(3)]
    patches = jnp.concatenate(cols, axis=-1).reshape(B * Ho * Wo, 9 * C)
    y = matmul_scale_bias_act(patches, p["w"], p["s"], p["b"], p["act"])
    return y.reshape(B, Ho, Wo, -1)


# ---------------------------------------------------------------------------
# Deterministic parameter construction (conv bias + BatchNorm folded into a
# per-output-channel (scale, bias) pair consumed by the kernels).
# ---------------------------------------------------------------------------
class Gen:
    def __init__(self, seed=0):
        self._key = jax.random.PRNGKey(seed)
        self._n = 0

    def normal(self, shape, scale=1.0):
        self._n += 1
        k = jax.random.fold_in(self._key, self._n)
        return (scale * jax.random.normal(k, shape)).astype(jnp.float32)


def _fold_bn(gen, cout, conv_bias, use_norm, eps=1e-5):
    if use_norm:
        gamma = 1.0 + gen.normal((cout,), 0.1)
        beta = gen.normal((cout,), 0.1)
        mean = gen.normal((cout,), 0.1)
        var = 1.0 + jnp.abs(gen.normal((cout,), 0.1))
        s = gamma / jnp.sqrt(var + eps)
        b = beta + (conv_bias - mean) * s
    else:
        s = jnp.ones((cout,), jnp.float32)
        b = conv_bias
    return s, b


def conv1x1_p(gen, cin, cout, use_bias, use_norm, act):
    w = gen.normal((cin, cout), 1.0 / math.sqrt(cin))
    cb = gen.normal((cout,), 0.1) if use_bias else jnp.zeros((cout,), jnp.float32)
    s, b = _fold_bn(gen, cout, cb, use_norm)
    return {"w": w, "s": s, "b": b, "act": act}


def dense_conv_p(gen, cin, cout, ks, use_bias, use_norm, act):
    w = gen.normal((ks, ks, cin, cout), 1.0 / math.sqrt(cin * ks * ks))
    cb = gen.normal((cout,), 0.1) if use_bias else jnp.zeros((cout,), jnp.float32)
    s, b = _fold_bn(gen, cout, cb, use_norm)
    return {"w": w.reshape(ks * ks * cin, cout), "s": s, "b": b, "act": act}


def dwconv_p(gen, c, ks, use_bias, use_norm, act):
    w = gen.normal((ks, ks, c), 1.0 / ks)
    cb = gen.normal((c,), 0.1) if use_bias else jnp.zeros((c,), jnp.float32)
    s, b = _fold_bn(gen, c, cb, use_norm)
    return {"w": w, "s": s, "b": b, "act": act}


def dsconv_p(gen, cin, cout, fewer_norm):
    return {
        "depth": dwconv_p(gen, cin, 3, use_bias=fewer_norm,
                          use_norm=not fewer_norm, act=True),
        "point": conv1x1_p(gen, cin, cout, use_bias=False, use_norm=True, act=False),
    }


def mbconv_p(gen, cin, cout, expand_ratio, fewer_norm):
    mid = round(cin * expand_ratio)
    return {
        "inverted": conv1x1_p(gen, cin, mid, use_bias=fewer_norm,
                              use_norm=not fewer_norm, act=True),
        "depth": dwconv_p(gen, mid, 3, use_bias=fewer_norm,
                          use_norm=not fewer_norm, act=True),
        "point": conv1x1_p(gen, mid, cout, use_bias=False, use_norm=True, act=False),
    }


def litemla_p(gen, cin, cout, dim):
    heads = cin // dim
    total = heads * dim
    g = 3 * heads
    # grouped 1x1 conv (groups = 3*heads) expressed as a block-diagonal matmul
    gw = gen.normal((g, dim, dim), 1.0 / math.sqrt(dim))
    w_blk = jnp.zeros((g * dim, g * dim), jnp.float32)
    for i in range(g):
        w_blk = w_blk.at[i * dim:(i + 1) * dim, i * dim:(i + 1) * dim].set(gw[i])
    agg_pw = {"w": w_blk, "s": jnp.ones((3 * total,), jnp.float32),
              "b": jnp.zeros((3 * total,), jnp.float32), "act": False}
    return {
        "qkv": conv1x1_p(gen, cin, 3 * total, use_bias=False, use_norm=False, act=False),
        "agg_dw": dwconv_p(gen, 3 * total, 5, use_bias=False, use_norm=False, act=False),
        "agg_pw": agg_pw,
        "proj": conv1x1_p(gen, 2 * total, cout, use_bias=False, use_norm=True, act=False),
    }


def vitblock_p(gen, c, dim, expand_ratio):
    return {
        "mla": litemla_p(gen, c, c, dim),
        "local": mbconv_p(gen, c, c, expand_ratio, fewer_norm=True),
    }


def build_backbone_params(gen, width_list, depth_list, in_channels, dim, expand_ratio):
    params = {
        "stem": {
            "conv": dense_conv_p(gen, in_channels, width_list[0], 3,
                                 use_bias=False, use_norm=True, act=True),
            "blocks": [dsconv_p(gen, width_list[0], width_list[0], fewer_norm=False)
                       for _ in range(depth_list[0])],
        },
        "stages": [],
    }
    cin = width_list[0]
    for w, d in zip(width_list[1:3], depth_list[1:3]):
        blocks = []
        for i in range(d):
            stride = 2 if i == 0 else 1
            blocks.append({"type": "mbconv", "stride": stride, "residual": stride == 1,
                           "p": mbconv_p(gen, cin, w, expand_ratio, fewer_norm=False)})
            cin = w
        params["stages"].append(blocks)
    for w, d in zip(width_list[3:], depth_list[3:]):
        blocks = [{"type": "mbconv", "stride": 2, "residual": False,
                   "p": mbconv_p(gen, cin, w, expand_ratio, fewer_norm=True)}]
        cin = w
        for _ in range(d):
            blocks.append({"type": "vit", "p": vitblock_p(gen, cin, dim, expand_ratio)})
        params["stages"].append(blocks)
    return params


# ---------------------------------------------------------------------------
# Forward pass
# ---------------------------------------------------------------------------
def backbone_forward(params, x_nhwc, dim):
    out = {}
    x = apply_stem_conv(x_nhwc, params["stem"]["conv"])
    for bp in params["stem"]["blocks"]:
        # ResidualBlock(DSConv, Identity): fully fused (dw + pw + residual)
        x = apply_fused_dw_pw(x, bp["depth"], bp["point"], ks=3, residual=True)
    out["stage0"] = x
    for sid, blocks in enumerate(params["stages"], 1):
        for blk in blocks:
            if blk["type"] == "mbconv":
                x = apply_fused_mbconv(x, blk["p"], blk["stride"], blk["residual"])
            else:  # EfficientViTBlock
                p = blk["p"]
                x = apply_litemla(x, p["mla"], dim)           # residual folded in proj
                x = apply_fused_mbconv(x, p["local"], 1, True)
        out[f"stage{sid}"] = x
    out["stage_final"] = x
    return out


# ---------------------------------------------------------------------------
if __name__ == "__main__":
    # Small EfficientViTBackbone config: width_list=[8,16,32,32], depth_list=[1,1,1,1],
    # in_channels=3, dim=8, expand_ratio=4.  Input (PyTorch NCHW): (2, 3, 32, 32).
    width_list = [8, 16, 32, 32]
    depth_list = [1, 1, 1, 1]
    in_channels, dim, expand_ratio = 3, 8, 4

    key = jax.random.PRNGKey(0)
    x_nchw = jax.random.normal(key, (2, in_channels, 32, 32), jnp.float32)

    gen = Gen(0)
    params = build_backbone_params(gen, width_list, depth_list,
                                   in_channels, dim, expand_ratio)

    x_nhwc = jnp.transpose(x_nchw, (0, 2, 3, 1))
    outs = backbone_forward(params, x_nhwc, dim)

    # Match the PyTorch output dict (NCHW).
    result = {"input": x_nchw}
    for name, v in outs.items():
        result[name] = jnp.transpose(v, (0, 3, 1, 2))

    jax.tree_util.tree_map(jax.block_until_ready, result)
    print("KERNEL_OK")
</pallas_src>

<mosaic_0001>
module attributes {stable_mosaic.version = 11 : i64} {
  func.func @_matmul_kernel(%arg0: i32, %arg1: memref<256x27xf32, #tpu.memory_space<vmem>>, %arg2: memref<27x8xf32, #tpu.memory_space<vmem>>, %arg3: memref<1x8xf32, #tpu.memory_space<vmem>>, %arg4: memref<1x8xf32, #tpu.memory_space<vmem>>, %arg5: memref<256x8xf32, #tpu.memory_space<vmem>>) attributes {dimension_semantics = [#tpu.dimension_semantics<parallel>], iteration_bounds = array<i64: 2>, scalar_prefetch = 0 : i64, scratch_operands = 0 : i64, tpu.core_type = #tpu.core_type<tc>, window_params = [{transform_indices = @transform_0, window_bounds = array<i64: 256, 27>}, {pipeline_mode = #tpu.pipeline_mode<synchronous>, transform_indices = @transform_1, window_bounds = array<i64: 27, 8>}, {pipeline_mode = #tpu.pipeline_mode<synchronous>, transform_indices = @transform_2, window_bounds = array<i64: 1, 8>}, {pipeline_mode = #tpu.pipeline_mode<synchronous>, transform_indices = @transform_3, window_bounds = array<i64: 1, 8>}, {transform_indices = @transform_4, window_bounds = array<i64: 256, 8>}]} {
    %c0 = arith.constant 0 : index
    %c0_0 = arith.constant 0 : index
    %0 = vector.load %arg1[%c0, %c0_0] : memref<256x27xf32, #tpu.memory_space<vmem>>, vector<256x27xf32>
    %c0_1 = arith.constant 0 : index
    %c0_2 = arith.constant 0 : index
    %1 = vector.load %arg2[%c0_1, %c0_2] : memref<27x8xf32, #tpu.memory_space<vmem>>, vector<27x8xf32>
    %cst = arith.constant dense<0.000000e+00> : vector<256x8xf32>
    %2 = tpu.matmul %0, %1, %cst {dimension_numbers = #tpu.dot_dimension_numbers<[1], [0], [0], [1], [0, 0, 1, 1], [], []>} : vector<256x27xf32>, vector<27x8xf32>, vector<256x8xf32> -> vector<256x8xf32>
    %c0_3 = arith.constant 0 : index
    %c0_4 = arith.constant 0 : index
    %3 = vector.load %arg3[%c0_3, %c0_4] : memref<1x8xf32, #tpu.memory_space<vmem>>, vector<1x8xf32>
    %4 = vector.broadcast %3 : vector<1x8xf32> to vector<256x8xf32>
    %5 = arith.mulf %2, %4 : vector<256x8xf32>
    %c0_5 = arith.constant 0 : index
    %c0_6 = arith.constant 0 : index
    %6 = vector.load %arg4[%c0_5, %c0_6] : memref<1x8xf32, #tpu.memory_space<vmem>>, vector<1x8xf32>
    %7 = vector.broadcast %6 : vector<1x8xf32> to vector<256x8xf32>
    %8 = arith.addf %5, %7 : vector<256x8xf32>
    %cst_7 = arith.constant 3.000000e+00 : f32
    %9 = vector.broadcast %cst_7 : f32 to vector<256x8xf32>
    %10 = arith.addf %8, %9 : vector<256x8xf32>
    %cst_8 = arith.constant 0.000000e+00 : f32
    %cst_9 = arith.constant 6.000000e+00 : f32
    %11 = vector.broadcast %cst_8 : f32 to vector<256x8xf32>
    %12 = arith.maximumf %11, %10 : vector<256x8xf32>
    %13 = vector.broadcast %cst_9 : f32 to vector<256x8xf32>
    %14 = arith.minimumf %13, %12 : vector<256x8xf32>
    %15 = arith.mulf %8, %14 : vector<256x8xf32>
    %cst_10 = arith.constant 0.166666672 : f32
    %16 = vector.broadcast %cst_10 : f32 to vector<256x8xf32>
    %17 = arith.mulf %15, %16 : vector<256x8xf32>
    %c0_11 = arith.constant 0 : index
    %c0_12 = arith.constant 0 : index
    %18 = vector.load %arg5[%c0_11, %c0_12] : memref<256x8xf32, #tpu.memory_space<vmem>>, vector<256x8xf32>
    tpu.vector_store %arg5[%c0_11, %c0_12], %17 {strides = array<i32>} : memref<256x8xf32, #tpu.memory_space<vmem>>, vector<256x8xf32>,
    return
  }
  func.func @transform_0(%arg0: i32) -> (i32, i32) {
    %c0_i32 = arith.constant 0 : i32
    %c0_i32_0 = arith.constant 0 : i32
    return %arg0, %c0_i32 : i32, i32
  }
  func.func @transform_1(%arg0: i32) -> (i32, i32) {
    %c0_i32 = arith.constant 0 : i32
    %c0_i32_0 = arith.constant 0 : i32
    %c0_i32_1 = arith.constant 0 : i32
    return %c0_i32, %c0_i32_0 : i32, i32
  }
  func.func @transform_2(%arg0: i32) -> (i32, i32) {
    %c0_i32 = arith.constant 0 : i32
    %c0_i32_0 = arith.constant 0 : i32
    %c0_i32_1 = arith.constant 0 : i32
    return %c0_i32, %c0_i32_0 : i32, i32
  }
  func.func @transform_3(%arg0: i32) -> (i32, i32) {
    %c0_i32 = arith.constant 0 : i32
    %c0_i32_0 = arith.constant 0 : i32
    %c0_i32_1 = arith.constant 0 : i32
    return %c0_i32, %c0_i32_0 : i32, i32
  }
  func.func @transform_4(%arg0: i32) -> (i32, i32) {
    %c0_i32 = arith.constant 0 : i32
    %c0_i32_0 = arith.constant 0 : i32
    return %arg0, %c0_i32 : i32, i32
  }
}

</mosaic_0001>

<bundles_post_ra>
// kernel: tpu_custom_call.1
= control target key start
LH: loop header
LB: loop body
LE: loop exit
PB: predicated region body
PF: predicated region fallthrough
CT: control target
= control target key end

     0   :  { %s1085_s15 = smov 0   ;;  %s1375_s0 = inlined_call_operand.vmem [shape: f32[512,27], index: 0, kind: input, shape index: {}]   ;;  %s1376_s1 = inlined_call_operand.vmem [shape: f32[27,8], index: 1, kind: input, shape index: {}]   ;;  %s1377_s2 = inlined_call_operand.vmem [shape: f32[1,8], index: 2, kind: input, shape index: {}]   ;;  %s1378_s3 = inlined_call_operand.vmem [shape: f32[1,8], index: 3, kind: input, shape index: {}]   ;;  %s1379_s4 = inlined_call_operand.vmem [shape: f32[512,8], index: 4, kind: output, shape index: {}]  }
   0x1 LB: > { %s890_s16 = sadd.s32 4294967295, %s1057_s15   ;;  %p894_p0 = scmp.ge.s32.totalorder %s1057_s15, 1  ;;  %s1057_s15 = sphi %s1085_s15, %s14_s15  }
   0x2   : > { %p163_p1 = scmp.lt.s32.totalorder %s1057_s15, 3 }
   0x4   : > { %p164_p2 = pnand %p894_p0, %p163_p1 }
   0x5   : > { %v233_v0 = vld [vmem:[%s1376_s1] sm:$0xff] (!%p164_p2)  ;;  %v234_v1 = vld [vmem:[%s1376_s1 + $0x8] sm:$0xff] (!%p164_p2)  ;;  %v235_v2 = vld [vmem:[%s1376_s1 + $0x10] sm:$0xff] (!%p164_p2)  ;;  %vm334_vm0 = vcmask (!%p164_p2), 1042432   ;;  %s895_s23 = sshll.u32 (!%p164_p2), %s890_s16, 5  ;;  %vm1059_vm1 = vmmov (!%p164_p2), 1  }
   0x6   : > { %167 = sbr.rel (%p164_p2) target bundleno = 293 (0x125), region = 36  ;;  %v1028_v3 = vpack.c.bf16 (!%p164_p2), %v234_v1, %v233_v0  ;;  %v236_v4 = vld [vmem:[%s1376_s1 + $0x18] sm:$0x7] (!%p164_p2)  ;;  %p190_p3 = scmp.lt.s32.totalorder (!%p164_p2), %s895_s23, 63  ;;  %vm1033_vm2 = vmpackc.low (!%p164_p2), %vm334_vm0, %vm1059_vm1  ;;  %vm237_vm3 = vcmask (!%p164_p2), 220160   ;;  %vm801_vm4 = vcmask (!%p164_p2), 64512  }
   0x7   : > { %v1032_v5 = vpack.c.bf16 (!%p164_p2), %v236_v4, %v235_v2  ;;  %v1182_v38 = vld [vmem:[%s1377_s2] ss:$0 sm:$0xff] (!%p164_p2) }
   0x8   : > { %1029 = vmatprep.subr.bf16.mxu0 (!%p164_p2), %v1028_v3  ;;  %1038 = vmatprep.subr.bf16.mxu1 (!%p164_p2), %v1028_v3  ;;  %v1187_v40 = vld [vmem:[%s1378_s3] ss:$0 sm:$0xff] (!%p164_p2) }
   0x9   : > { %1031 = vmatpush3.bf16.msra.mxu0 (!%p164_p2), %v1028_v3  ;;  %1040 = vmatpush3.bf16.msra.mxu1 (!%p164_p2), %v1028_v3 }
   0xa   : > { %1034 = vmatprep.subr.msk.bf16.mxu0 (!%p164_p2), %vm1033_vm2, %v1032_v5  ;;  %1039 = vmatprep.subr.msk.bf16.mxu1 (!%p164_p2), %vm1033_vm2, %v1032_v5 }
   0xd   : > { %s1381_s23 = smov (!%p190_p3, %s895_s23), 63  ;;  %1037 = vmatpush3.bf16.msk.msra.mxu0 %vm1033_vm2, %v1032_v5  ;;  %1041 = vmatpush3.bf16.msk.msra.mxu1 %vm1033_vm2, %v1032_v5 }
   0xe   : > { %s896_s26 = sshll.u32 %s1381_s23, 3 }
   0xf   : > { %s1113_s29 = scalar_lea.vmem %s1375_s0, %s896_s26  ;;  %s1210_s10 = scalar_lea.vmem %s1379_s4, %s896_s26 }
  0x10   : > { %v201_v6 = vld [vmem:[%s1113_s29] sm:$0xff]  ;;  %v202_v8 = vld [vmem:[%s1113_s29 + $0x8] sm:$0xff]  ;;  %v203_v10 = vld [vmem:[%s1113_s29 + $0x10] sm:$0xff] }
  0x11   : > { %v217_v7 = vld [vmem:[%s1113_s29 + $0x80] sm:$0xff]  ;;  %v218_v9 = vld [vmem:[%s1113_s29 + $0x88] sm:$0xff]  ;;  %980 = vmatprep.mubr.msk.f32.mxu0 %vm237_vm3, %v201_v6  ;;  %v219_v11 = vld [vmem:[%s1113_s29 + $0x90] sm:$0xff] }
  0x12   : > { %1004 = vmatprep.mubr.msk.f32.mxu1 %vm237_vm3, %v217_v7  ;;  %981 = vmatmul.mubr.msk.f32.vlgmr.msra.gmra.mrb[0].mxu0 %vm237_vm3, %v202_v8  ;;  %v204_v12 = vld [vmem:[%s1113_s29 + $0x18] sm:$0xff]  ;;  %v205_v14 = vld [vmem:[%s1113_s29 + $0x20] sm:$0xff]  ;;  %v206_v16 = vld [vmem:[%s1113_s29 + $0x28] sm:$0xff] }
  0x13   : > { %1005 = vmatmul.mubr.msk.f32.vlgmr.msra.gmra.mrb[0].mxu1 %vm237_vm3, %v218_v9  ;;  %983 = vmatprep.mubr.msk.f32.mxu0 %vm237_vm3, %v203_v10  ;;  %v220_v13 = vld [vmem:[%s1113_s29 + $0x98] sm:$0xff]  ;;  %v221_v15 = vld [vmem:[%s1113_s29 + $0xa0] sm:$0xff]  ;;  %v222_v17 = vld [vmem:[%s1113_s29 + $0xa8] sm:$0xff] }
  0x14   : > { %1007 = vmatprep.mubr.msk.f32.mxu1 %vm237_vm3, %v219_v11  ;;  %v207_v18 = vld [vmem:[%s1113_s29 + $0x30] sm:$0xff]  ;;  %v208_v20 = vld [vmem:[%s1113_s29 + $0x38] sm:$0xff]  ;;  %v209_v22 = vld [vmem:[%s1113_s29 + $0x40] sm:$0xff] }
  0x15   : > { %v223_v19 = vld [vmem:[%s1113_s29 + $0xb0] sm:$0xff]  ;;  %v224_v21 = vld [vmem:[%s1113_s29 + $0xb8] sm:$0xff]  ;;  %v225_v23 = vld [vmem:[%s1113_s29 + $0xc0] sm:$0xff] }
  0x16   : > { %984 = vmatmul.mubr.msk.f32.gmra.mrb[2].mxu0 %vm237_vm3, %v204_v12  ;;  %v210_v24 = vld [vmem:[%s1113_s29 + $0x48] sm:$0xff]  ;;  %v211_v26 = vld [vmem:[%s1113_s29 + $0x50] sm:$0xff]  ;;  %v212_v28 = vld [vmem:[%s1113_s29 + $0x58] sm:$0xff] }
  0x17   : > { %1008 = vmatmul.mubr.msk.f32.gmra.mrb[2].mxu1 %vm237_vm3, %v220_v13  ;;  %986 = vmatprep.mubr.msk.f32.mxu0 %vm237_vm3, %v205_v14  ;;  %v226_v25 = vld [vmem:[%s1113_s29 + $0xc8] sm:$0xff]  ;;  %v227_v27 = vld [vmem:[%s1113_s29 + $0xd0] sm:$0xff]  ;;  %v228_v29 = vld [vmem:[%s1113_s29 + $0xd8] sm:$0xff] }
  0x18   : > { %1010 = vmatprep.mubr.msk.f32.mxu1 %vm237_vm3, %v221_v15  ;;  %v213_v30 = vld [vmem:[%s1113_s29 + $0x60] sm:$0xff]  ;;  %v214_v32 = vld [vmem:[%s1113_s29 + $0x68] sm:$0xff]  ;;  %v215_v34 = vld [vmem:[%s1113_s29 + $0x70] sm:$0xff] }
  0x19   : > { %v229_v31 = vld [vmem:[%s1113_s29 + $0xe0] sm:$0xff]  ;;  %v230_v33 = vld [vmem:[%s1113_s29 + $0xe8] sm:$0xff]  ;;  %v231_v35 = vld [vmem:[%s1113_s29 + $0xf0] sm:$0xff] }
  0x1a   : > { %987 = vmatmul.mubr.msk.f32.gmra.mrb[4].mxu0 %vm237_vm3, %v206_v16  ;;  %v216_v36 = vld [vmem:[%s1113_s29 + $0x78] sm:$0xff] }
  0x1b   : > { %1011 = vmatmul.mubr.msk.f32.gmra.mrb[4].mxu1 %vm237_vm3, %v222_v17  ;;  %989 = vmatprep.mubr.msk.f32.mxu0 %vm237_vm3, %v207_v18  ;;  %v232_v37 = vld [vmem:[%s1113_s29 + $0xf8] sm:$0xff] }
  0x1c   : > { %1013 = vmatprep.mubr.msk.f32.mxu1 %vm237_vm3, %v223_v19 }
  0x1e   : > { %990 = vmatmul.mubr.msk.f32.gmra.mrb[6].mxu0 %vm237_vm3, %v208_v20 }
  0x1f   : > { %1014 = vmatmul.mubr.msk.f32.gmra.mrb[6].mxu1 %vm237_vm3, %v224_v21  ;;  %992 = vmatprep.mubr.msk.f32.mxu0 %vm237_vm3, %v209_v22 }
  0x20   : > { %1016 = vmatprep.mubr.msk.f32.mxu1 %vm237_vm3, %v225_v23 }
  0x22   : > { %993 = vmatmul.mubr.msk.f32.gmra.mrb[8].mxu0 %vm237_vm3, %v210_v24 }
  0x23   : > { %1017 = vmatmul.mubr.msk.f32.gmra.mrb[8].mxu1 %vm237_vm3, %v226_v25  ;;  %995 = vmatprep.mubr.msk.f32.mxu0 %vm237_vm3, %v211_v26 }
  0x24   : > { %1019 = vmatprep.mubr.msk.f32.mxu1 %vm237_vm3, %v227_v27 }
  0x26   : > { %996 = vmatmul.mubr.msk.f32.gmra.mrb[10].mxu0 %vm237_vm3, %v212_v28 }
  0x27   : > { %1020 = vmatmul.mubr.msk.f32.gmra.mrb[10].mxu1 %vm237_vm3, %v228_v29  ;;  %998 = vmatprep.mubr.msk.f32.mxu0 %vm237_vm3, %v213_v30 }
  0x28   : > { %1022 = vmatprep.mubr.msk.f32.mxu1 %vm237_vm3, %v229_v31 }
  0x2a   : > { %999 = vmatmul.mubr.msk.f32.gmra.mrb[12].mxu0 %vm237_vm3, %v214_v32 }
  0x2b   : > { %1023 = vmatmul.mubr.msk.f32.gmra.mrb[12].mxu1 %vm237_vm3, %v230_v33  ;;  %1001 = vmatprep.mubr.msk.f32.mxu0 %vm237_vm3, %v215_v34 }
  0x2c   : > { %1025 = vmatprep.mubr.msk.f32.mxu1 %vm237_vm3, %v231_v35 }
  0x2e   : > { %1002 = vmatmul.mubr.msk.f32.gmra.mrb[14].mxu0 %vm237_vm3, %v216_v36 }
  0x2f   : > { %1026 = vmatmul.mubr.msk.f32.gmra.mrb[14].mxu1 %vm237_vm3, %v232_v37 }
  0xe5   : > { %v982_v39 = vpop.f32.mrb[0].mxu0 }
  0xe6   : > { %v1006_v41 = vpop.f32.mrb[0].mxu1  ;;  %v571_v42 = vmul.f32 %v982_v39, %v1182_v38  ;;  %v404_v44 = vpop.f32.mrb[1].mxu0 }
  0xe7   : > { %v587_v43 = vmul.f32 %v1006_v41, %v1182_v38  ;;  %v484_v45 = vpop.f32.mrb[1].mxu1  ;;  %v570_v46 = vmul.f32 %v1182_v38, %v404_v44 }
  0xe8   : > { %v586_v47 = vmul.f32 %v1182_v38, %v484_v45  ;;  %v610_v48 = vadd.f32 %v1187_v40, %v571_v42 }
  0xe9   : > { %v626_v49 = vadd.f32 %v1187_v40, %v587_v43  ;;  %v609_v50 = vadd.f32 %v1187_v40, %v570_v46  ;;  %v985_v52 = vpop.f32.mrb[2].mxu0 }
  0xea   : > { %v625_v51 = vadd.f32 %v1187_v40, %v586_v47  ;;  %v1009_v53 = vpop.f32.mrb[2].mxu1  ;;  %v642_v54 = vadd.f32 3.0, %v610_v48  ;;  %v573_v56 = vmul.f32 %v985_v52, %v1182_v38  ;;  %v414_v58 = vpop.f32.mrb[3].mxu0 }
  0xeb   : > { %v658_v55 = vadd.f32 3.0, %v626_v49  ;;  %v589_v57 = vmul.f32 %v1009_v53, %v1182_v38  ;;  %v494_v59 = vpop.f32.mrb[3].mxu1  ;;  %v641_v60 = vadd.f32 3.0, %v609_v50  ;;  %v572_v62 = vmul.f32 %v1182_v38, %v414_v58 }
  0xec   : > { %v657_v61 = vadd.f32 3.0, %v625_v51  ;;  %v588_v63 = vmul.f32 %v1182_v38, %v494_v59  ;;  %v674_v0 = vmax.f32 %v642_v54, 0.0  ;;  %v612_v2 = vadd.f32 %v1187_v40, %v573_v56 }
  0xed   : > { %v690_v1 = vmax.f32 %v658_v55, 0.0  ;;  %v628_v3 = vadd.f32 %v1187_v40, %v589_v57  ;;  %v673_v4 = vmax.f32 %v641_v60, 0.0  ;;  %v611_v6 = vadd.f32 %v1187_v40, %v572_v62  ;;  %v988_v8 = vpop.f32.mrb[4].mxu0 }
  0xee   : > { %v689_v5 = vmax.f32 %v657_v61, 0.0  ;;  %v627_v7 = vadd.f32 %v1187_v40, %v588_v63  ;;  %v1012_v9 = vpop.f32.mrb[4].mxu1  ;;  %v706_v10 = vmin.f32 %v674_v0, 6.0  ;;  %v644_v12 = vadd.f32 3.0, %v612_v2  ;;  %v424_v14 = vpop.f32.mrb[5].mxu0 }
  0xef   : > { %v722_v11 = vmin.f32 %v690_v1, 6.0  ;;  %v660_v13 = vadd.f32 3.0, %v628_v3  ;;  %v504_v15 = vpop.f32.mrb[5].mxu1  ;;  %v705_v16 = vmin.f32 %v673_v4, 6.0  ;;  %v643_v18 = vadd.f32 3.0, %v611_v6 }
  0xf0   : > { %v721_v17 = vmin.f32 %v689_v5, 6.0  ;;  %v659_v19 = vadd.f32 3.0, %v627_v7  ;;  %v738_v20 = vmul.f32 %v706_v10, %v610_v48  ;;  %v676_v22 = vmax.f32 %v644_v12, 0.0 }
  0xf1   : > { %v754_v21 = vmul.f32 %v722_v11, %v626_v49  ;;  %v692_v23 = vmax.f32 %v660_v13, 0.0  ;;  %v737_v24 = vmul.f32 %v705_v16, %v609_v50  ;;  %v675_v26 = vmax.f32 %v643_v18, 0.0  ;;  %v991_v28 = vpop.f32.mrb[6].mxu0 }
  0xf2   : > { %v753_v25 = vmul.f32 %v721_v17, %v625_v51  ;;  %v691_v27 = vmax.f32 %v659_v19, 0.0  ;;  %v1015_v29 = vpop.f32.mrb[6].mxu1  ;;  %v770_v30 = vmul.f32 0.16666667, %v738_v20  ;;  %v708_v32 = vmin.f32 %v676_v22, 6.0  ;;  %v434_v44 = vpop.f32.mrb[7].mxu0 }
  0xf3   : > { %v786_v31 = vmul.f32 0.16666667, %v754_v21  ;;  %v724_v33 = vmin.f32 %v692_v23, 6.0  ;;  %v769_v34 = vmul.f32 0.16666667, %v737_v24  ;;  %v707_v36 = vmin.f32 %v675_v26, 6.0 }
  0xf4   : > { %v785_v35 = vmul.f32 0.16666667, %v753_v25  ;;  %v723_v37 = vmin.f32 %v691_v27, 6.0  ;;  %803 = vst.msk [vmem:[%s1210_s10 + $0x8] sm:$0xff] %vm801_vm4, %v770_v30  ;;  %v740_v39 = vmul.f32 %v708_v32, %v612_v2  ;;  %v575_v42 = vmul.f32 %v988_v8, %v1182_v38  ;;  %v514_v45 = vpop.f32.mrb[7].mxu1 }
  0xf5   : > { %819 = vst.msk [vmem:[%s1210_s10 + $0x88] sm:$0xff] %vm801_vm4, %v786_v31  ;;  %v756_v41 = vmul.f32 %v724_v33, %v628_v3  ;;  %v591_v43 = vmul.f32 %v1012_v9, %v1182_v38  ;;  %802 = vst.msk [vmem:[%s1210_s10] sm:$0xff] %vm801_vm4, %v769_v34  ;;  %v739_v46 = vmul.f32 %v707_v36, %v611_v6  ;;  %v1224_v50 = vpop.f32.mrb[8].mxu0 }
  0xf6   : > { %818 = vst.msk [vmem:[%s1210_s10 + $0x80] sm:$0xff] %vm801_vm4, %v785_v35  ;;  %v755_v47 = vmul.f32 %v723_v37, %v627_v7  ;;  %v574_v48 = vmul.f32 %v1182_v38, %v424_v14  ;;  %v590_v49 = vmul.f32 %v1182_v38, %v504_v15  ;;  %v1226_v51 = vpop.f32.mrb[8].mxu1  ;;  %v772_v52 = vmul.f32 0.16666667, %v740_v39  ;;  %v1230_v56 = vpop.f32.mrb[9].mxu0 }
  0xf7   : > { %v788_v53 = vmul.f32 0.16666667, %v756_v41  ;;  %v614_v54 = vadd.f32 %v1187_v40, %v575_v42  ;;  %v630_v55 = vadd.f32 %v1187_v40, %v591_v43  ;;  %v1232_v57 = vpop.f32.mrb[9].mxu1  ;;  %v771_v58 = vmul.f32 0.16666667, %v739_v46 }
  0xf8   : > { %v787_v59 = vmul.f32 0.16666667, %v755_v47  ;;  %v613_v60 = vadd.f32 %v1187_v40, %v574_v48  ;;  %v629_v61 = vadd.f32 %v1187_v40, %v590_v49  ;;  %805 = vst.msk [vmem:[%s1210_s10 + $0x18] sm:$0xff] %vm801_vm4, %v772_v52  ;;  %v577_v0 = vmul.f32 %v991_v28, %v1182_v38 }
  0xf9   : > { %821 = vst.msk [vmem:[%s1210_s10 + $0x98] sm:$0xff] %vm801_vm4, %v788_v53  ;;  %v646_v62 = vadd.f32 3.0, %v614_v54  ;;  %v662_v63 = vadd.f32 3.0, %v630_v55  ;;  %v593_v1 = vmul.f32 %v1015_v29, %v1182_v38  ;;  %804 = vst.msk [vmem:[%s1210_s10 + $0x10] sm:$0xff] %vm801_vm4, %v771_v58  ;;  %v576_v4 = vmul.f32 %v1182_v38, %v434_v44  ;;  %v1248_v6 = vpop.f32.mrb[10].mxu0 }
  0xfa   : > { %820 = vst.msk [vmem:[%s1210_s10 + $0x90] sm:$0xff] %vm801_vm4, %v787_v59  ;;  %v645_v2 = vadd.f32 3.0, %v613_v60  ;;  %v661_v3 = vadd.f32 3.0, %v629_v61  ;;  %v592_v5 = vmul.f32 %v1182_v38, %v514_v45  ;;  %v1250_v7 = vpop.f32.mrb[10].mxu1  ;;  %v616_v10 = vadd.f32 %v1187_v40, %v577_v0  ;;  %v1254_v12 = vpop.f32.mrb[11].mxu0 }
  0xfb   : > { %v678_v8 = vmax.f32 %v646_v62, 0.0  ;;  %v694_v9 = vmax.f32 %v662_v63, 0.0  ;;  %v632_v11 = vadd.f32 %v1187_v40, %v593_v1  ;;  %v1256_v13 = vpop.f32.mrb[11].mxu1  ;;  %v615_v16 = vadd.f32 %v1187_v40, %v576_v4 }
  0xfc   : > { %v677_v14 = vmax.f32 %v645_v2, 0.0  ;;  %v693_v15 = vmax.f32 %v661_v3, 0.0  ;;  %v631_v17 = vadd.f32 %v1187_v40, %v592_v5  ;;  %v648_v20 = vadd.f32 3.0, %v616_v10 }
  0xfd   : > { %v710_v18 = vmin.f32 %v678_v8, 6.0  ;;  %v726_v19 = vmin.f32 %v694_v9, 6.0  ;;  %v664_v21 = vadd.f32 3.0, %v632_v11  ;;  %v647_v24 = vadd.f32 3.0, %v615_v16  ;;  %v1260_v26 = vpop.f32.mrb[12].mxu0 }
  0xfe   : > { %v709_v22 = vmin.f32 %v677_v14, 6.0  ;;  %v725_v23 = vmin.f32 %v693_v15, 6.0  ;;  %v663_v25 = vadd.f32 3.0, %v631_v17  ;;  %v1262_v27 = vpop.f32.mrb[12].mxu1  ;;  %v680_v30 = vmax.f32 %v648_v20, 0.0  ;;  %v1264_v32 = vpop.f32.mrb[13].mxu0 }
  0xff   : > { %v742_v28 = vmul.f32 %v710_v18, %v614_v54  ;;  %v758_v29 = vmul.f32 %v726_v19, %v630_v55  ;;  %v696_v31 = vmax.f32 %v664_v21, 0.0  ;;  %v1266_v33 = vpop.f32.mrb[13].mxu1  ;;  %v679_v36 = vmax.f32 %v647_v24, 0.0 }
 0x100   : > { %v741_v34 = vmul.f32 %v709_v22, %v613_v60  ;;  %v757_v35 = vmul.f32 %v725_v23, %v629_v61  ;;  %v695_v37 = vmax.f32 %v663_v25, 0.0  ;;  %v712_v42 = vmin.f32 %v680_v30, 6.0 }
 0x101   : > { %v774_v39 = vmul.f32 0.16666667, %v742_v28  ;;  %v790_v41 = vmul.f32 0.16666667, %v758_v29  ;;  %v728_v43 = vmin.f32 %v696_v31, 6.0  ;;  %v711_v46 = vmin.f32 %v679_v36, 6.0 }
 0x102   : > { %v773_v44 = vmul.f32 0.16666667, %v741_v34  ;;  %v789_v45 = vmul.f32 0.16666667, %v757_v35  ;;  %v727_v47 = vmin.f32 %v695_v37, 6.0  ;;  %v744_v48 = vmul.f32 %v712_v42, %v616_v10  ;;  %v1276_v54 = vpop.f32.mrb[14].mxu0 }
 0x103   : > { %807 = vst.msk [vmem:[%s1210_s10 + $0x28] sm:$0xff] %vm801_vm4, %v774_v39  ;;  %823 = vst.msk [vmem:[%s1210_s10 + $0xa8] sm:$0xff] %vm801_vm4, %v790_v41  ;;  %v760_v49 = vmul.f32 %v728_v43, %v632_v11  ;;  %v579_v52 = vmul.f32 %v1224_v50, %v1182_v38  ;;  %v595_v53 = vmul.f32 %v1226_v51, %v1182_v38  ;;  %v1278_v55 = vpop.f32.mrb[14].mxu1  ;;  %v1288_v61 = vpop.f32.mrb[15].mxu0 }
 0x104   : > { %806 = vst.msk [vmem:[%s1210_s10 + $0x20] sm:$0xff] %vm801_vm4, %v773_v44  ;;  %822 = vst.msk [vmem:[%s1210_s10 + $0xa0] sm:$0xff] %vm801_vm4, %v789_v45  ;;  %v743_v58 = vmul.f32 %v711_v46, %v615_v16  ;;  %v759_v59 = vmul.f32 %v727_v47, %v631_v17  ;;  %v578_v60 = vmul.f32 %v1182_v38, %v1230_v56  ;;  %v1290_v51 = vpop.f32.mrb[15].mxu1  ;;  %v776_v62 = vmul.f32 0.16666667, %v744_v48 }
 0x105   : > { %v594_v50 = vmul.f32 %v1182_v38, %v1232_v57  ;;  %v792_v63 = vmul.f32 0.16666667, %v760_v49  ;;  %v618_v0 = vadd.f32 %v1187_v40, %v579_v52  ;;  %v634_v1 = vadd.f32 %v1187_v40, %v595_v53 }
 0x106   : > { %v775_v2 = vmul.f32 0.16666667, %v743_v58  ;;  %v791_v3 = vmul.f32 0.16666667, %v759_v59  ;;  %v617_v4 = vadd.f32 %v1187_v40, %v578_v60  ;;  %809 = vst.msk [vmem:[%s1210_s10 + $0x38] sm:$0xff] %vm801_vm4, %v776_v62  ;;  %v581_v8 = vmul.f32 %v1248_v6, %v1182_v38 }
 0x107   : > { %v633_v56 = vadd.f32 %v1187_v40, %v594_v50  ;;  %825 = vst.msk [vmem:[%s1210_s10 + $0xb8] sm:$0xff] %vm801_vm4, %v792_v63  ;;  %v650_v57 = vadd.f32 3.0, %v618_v0  ;;  %v666_v5 = vadd.f32 3.0, %v634_v1  ;;  %v597_v9 = vmul.f32 %v1250_v7, %v1182_v38 }
 0x108   : > { %808 = vst.msk [vmem:[%s1210_s10 + $0x30] sm:$0xff] %vm801_vm4, %v775_v2  ;;  %824 = vst.msk [vmem:[%s1210_s10 + $0xb0] sm:$0xff] %vm801_vm4, %v791_v3  ;;  %v649_v10 = vadd.f32 3.0, %v617_v4  ;;  %v580_v14 = vmul.f32 %v1182_v38, %v1254_v12  ;;  %v596_v15 = vmul.f32 %v1182_v38, %v1256_v13  ;;  %v620_v18 = vadd.f32 %v1187_v40, %v581_v8 }
 0x109   : > { %v665_v11 = vadd.f32 3.0, %v633_v56  ;;  %v682_v16 = vmax.f32 %v650_v57, 0.0  ;;  %v698_v17 = vmax.f32 %v666_v5, 0.0  ;;  %v636_v6 = vadd.f32 %v1187_v40, %v597_v9 }
 0x10a   : > { %v681_v19 = vmax.f32 %v649_v10, 0.0  ;;  %v619_v20 = vadd.f32 %v1187_v40, %v580_v14  ;;  %v635_v21 = vadd.f32 %v1187_v40, %v596_v15  ;;  %v652_v24 = vadd.f32 3.0, %v620_v18 }
 0x10b   : > { %v697_v7 = vmax.f32 %v665_v11, 0.0  ;;  %v714_v22 = vmin.f32 %v682_v16, 6.0  ;;  %v730_v23 = vmin.f32 %v698_v17, 6.0  ;;  %v668_v25 = vadd.f32 3.0, %v636_v6 }
 0x10c   : > { %v713_v12 = vmin.f32 %v681_v19, 6.0  ;;  %v651_v29 = vadd.f32 3.0, %v619_v20  ;;  %v667_v13 = vadd.f32 3.0, %v635_v21  ;;  %v684_v34 = vmax.f32 %v652_v24, 0.0 }
 0x10d   : > { %v729_v28 = vmin.f32 %v697_v7, 6.0  ;;  %v746_v30 = vmul.f32 %v714_v22, %v618_v0  ;;  %v762_v31 = vmul.f32 %v730_v23, %v634_v1  ;;  %v700_v35 = vmax.f32 %v668_v25, 0.0 }
 0x10e   : > { %v745_v36 = vmul.f32 %v713_v12, %v617_v4  ;;  %v683_v39 = vmax.f32 %v651_v29, 0.0  ;;  %v699_v41 = vmax.f32 %v667_v13, 0.0  ;;  %v716_v44 = vmin.f32 %v684_v34, 6.0 }
 0x10f   : > { %v761_v37 = vmul.f32 %v729_v28, %v633_v56  ;;  %v778_v42 = vmul.f32 0.16666667, %v746_v30  ;;  %v794_v43 = vmul.f32 0.16666667, %v762_v31  ;;  %v732_v45 = vmin.f32 %v700_v35, 6.0 }
 0x110   : > { %v777_v46 = vmul.f32 0.16666667, %v745_v36  ;;  %v715_v48 = vmin.f32 %v683_v39, 6.0  ;;  %v731_v49 = vmin.f32 %v699_v41, 6.0  ;;  %v748_v52 = vmul.f32 %v716_v44, %v620_v18 }
 0x111   : > { %v793_v47 = vmul.f32 0.16666667, %v761_v37  ;;  %811 = vst.msk [vmem:[%s1210_s10 + $0x48] sm:$0xff] %vm801_vm4, %v778_v42  ;;  %827 = vst.msk [vmem:[%s1210_s10 + $0xc8] sm:$0xff] %vm801_vm4, %v794_v43  ;;  %v764_v53 = vmul.f32 %v732_v45, %v636_v6  ;;  %v583_v58 = vmul.f32 %v1260_v26, %v1182_v38  ;;  %v599_v59 = vmul.f32 %v1262_v27, %v1182_v38 }
 0x112   : > { %810 = vst.msk [vmem:[%s1210_s10 + $0x40] sm:$0xff] %vm801_vm4, %v777_v46  ;;  %v747_v60 = vmul.f32 %v715_v48, %v619_v20  ;;  %v763_v50 = vmul.f32 %v731_v49, %v635_v21  ;;  %v582_v62 = vmul.f32 %v1182_v38, %v1264_v32  ;;  %v598_v63 = vmul.f32 %v1182_v38, %v1266_v33 }
 0x113   : > { %826 = vst.msk [vmem:[%s1210_s10 + $0xc0] sm:$0xff] %vm801_vm4, %v793_v47  ;;  %v780_v26 = vmul.f32 0.16666667, %v748_v52  ;;  %v796_v0 = vmul.f32 0.16666667, %v764_v53  ;;  %v622_v1 = vadd.f32 %v1187_v40, %v583_v58  ;;  %v638_v27 = vadd.f32 %v1187_v40, %v599_v59 }
 0x114   : > { %v779_v2 = vmul.f32 0.16666667, %v747_v60  ;;  %v795_v3 = vmul.f32 0.16666667, %v763_v50  ;;  %v621_v4 = vadd.f32 %v1187_v40, %v582_v62  ;;  %v637_v56 = vadd.f32 %v1187_v40, %v598_v63 }
 0x115   : > { %813 = vst.msk [vmem:[%s1210_s10 + $0x58] sm:$0xff] %vm801_vm4, %v780_v26  ;;  %829 = vst.msk [vmem:[%s1210_s10 + $0xd8] sm:$0xff] %vm801_vm4, %v796_v0  ;;  %v654_v32 = vadd.f32 3.0, %v622_v1  ;;  %v670_v57 = vadd.f32 3.0, %v638_v27  ;;  %v585_v33 = vmul.f32 %v1276_v54, %v1182_v38  ;;  %v601_v5 = vmul.f32 %v1278_v55, %v1182_v38 }
 0x116   : > { %812 = vst.msk [vmem:[%s1210_s10 + $0x50] sm:$0xff] %vm801_vm4, %v779_v2  ;;  %828 = vst.msk [vmem:[%s1210_s10 + $0xd0] sm:$0xff] %vm801_vm4, %v795_v3  ;;  %v653_v8 = vadd.f32 3.0, %v621_v4  ;;  %v669_v9 = vadd.f32 3.0, %v637_v56  ;;  %v584_v10 = vmul.f32 %v1182_v38, %v1288_v61  ;;  %v600_v11 = vmul.f32 %v1182_v38, %v1290_v51 }
 0x117   : > { %v686_v14 = vmax.f32 %v654_v32, 0.0  ;;  %v702_v15 = vmax.f32 %v670_v57, 0.0  ;;  %v624_v16 = vadd.f32 %v1187_v40, %v585_v33  ;;  %v640_v54 = vadd.f32 %v1187_v40, %v601_v5 }
 0x118   : > { %v685_v17 = vmax.f32 %v653_v8, 0.0  ;;  %v701_v55 = vmax.f32 %v669_v9, 0.0  ;;  %v623_v18 = vadd.f32 %v1187_v40, %v584_v10  ;;  %v639_v6 = vadd.f32 %v1187_v40, %v600_v11 }
 0x119   : > { %v718_v19 = vmin.f32 %v686_v14, 6.0  ;;  %v734_v7 = vmin.f32 %v702_v15, 6.0  ;;  %v656_v20 = vadd.f32 3.0, %v624_v16  ;;  %v672_v21 = vadd.f32 3.0, %v640_v54 }
 0x11a   : > { %v717_v61 = vmin.f32 %v685_v17, 6.0  ;;  %v733_v22 = vmin.f32 %v701_v55, 6.0  ;;  %v655_v23 = vadd.f32 3.0, %v623_v18  ;;  %v671_v38 = vadd.f32 3.0, %v639_v6 }
 0x11b   : > { %v750_v51 = vmul.f32 %v718_v19, %v622_v1  ;;  %v766_v24 = vmul.f32 %v734_v7, %v638_v27  ;;  %v688_v25 = vmax.f32 %v656_v20, 0.0  ;;  %v704_v12 = vmax.f32 %v672_v21, 0.0 }
 0x11c   : > { %v749_v28 = vmul.f32 %v717_v61, %v621_v4  ;;  %v765_v29 = vmul.f32 %v733_v22, %v637_v56  ;;  %v687_v13 = vmax.f32 %v655_v23, 0.0  ;;  %v703_v40 = vmax.f32 %v671_v38, 0.0 }
 0x11d   : > { %v782_v30 = vmul.f32 0.16666667, %v750_v51  ;;  %v798_v31 = vmul.f32 0.16666667, %v766_v24  ;;  %v720_v34 = vmin.f32 %v688_v25, 6.0  ;;  %v736_v35 = vmin.f32 %v704_v12, 6.0 }
 0x11e   : > { %v781_v36 = vmul.f32 0.16666667, %v749_v28  ;;  %v797_v37 = vmul.f32 0.16666667, %v765_v29  ;;  %v719_v39 = vmin.f32 %v687_v13, 6.0  ;;  %v735_v41 = vmin.f32 %v703_v40, 6.0 }
 0x11f   : > { %815 = vst.msk [vmem:[%s1210_s10 + $0x68] sm:$0xff] %vm801_vm4, %v782_v30  ;;  %831 = vst.msk [vmem:[%s1210_s10 + $0xe8] sm:$0xff] %vm801_vm4, %v798_v31  ;;  %v752_v42 = vmul.f32 %v720_v34, %v624_v16  ;;  %v768_v43 = vmul.f32 %v736_v35, %v640_v54 }
 0x120   : > { %814 = vst.msk [vmem:[%s1210_s10 + $0x60] sm:$0xff] %vm801_vm4, %v781_v36  ;;  %830 = vst.msk [vmem:[%s1210_s10 + $0xe0] sm:$0xff] %vm801_vm4, %v797_v37  ;;  %v751_v44 = vmul.f32 %v719_v39, %v623_v18  ;;  %v767_v45 = vmul.f32 %v735_v41, %v639_v6 }
 0x121   : > { %v784_v46 = vmul.f32 0.16666667, %v752_v42  ;;  %v800_v47 = vmul.f32 0.16666667, %v768_v43 }
 0x122   : > { %v783_v48 = vmul.f32 0.16666667, %v751_v44  ;;  %v799_v49 = vmul.f32 0.16666667, %v767_v45 }
 0x123   : > { %817 = vst.msk [vmem:[%s1210_s10 + $0x78] sm:$0xff] %vm801_vm4, %v784_v46  ;;  %833 = vst.msk [vmem:[%s1210_s10 + $0xf8] sm:$0xff] %vm801_vm4, %v800_v47 }
 0x124   : > { %816 = vst.msk [vmem:[%s1210_s10 + $0x70] sm:$0xff] %vm801_vm4, %v783_v48  ;;  %832 = vst.msk [vmem:[%s1210_s10 + $0xf0] sm:$0xff] %vm801_vm4, %v799_v49 }
 0x125 PF: > { %s14_s15 = sadd.s32 1, %s1057_s15  }
 0x126   : > { %p11_p4 = scmp.ge.s32.totalorder %s14_s15, 4  }
 0x128   :  { %13 = sbr.rel (!%p11_p4) target bundleno = 1 (0x1), region = 66 }

</bundles_post_ra>
